<compile_context>
chip_gen: v6e
topology: v6e:2x2x1
jax: 0.10.0
libtpu: 0.0.40
codegen_flags: <defaults>
</compile_context>

<pallas_src>
import jax
import jax.numpy as jnp
from jax.experimental import pallas as pl
from jax.experimental.pallas import tpu as pltpu


def mlp_kernel(x_ref, w_ref, b_ref, o_ref):
    # x_ref: (TB, P) bf16 | w_ref: (3, P, P) bf16 | b_ref: (3, P) f32
    # o_ref: (TB, P) f32
    x = x_ref[...]

    # Load each bias once per kernel body (no per-iteration re-broadcasts).
    b1 = b_ref[0:1, :]
    b2 = b_ref[1:2, :]
    b3 = b_ref[2:3, :]

    h1 = jnp.dot(x, w_ref[0], preferred_element_type=jnp.float32)
    h1 = jnp.maximum(h1 + b1, 0.0).astype(jnp.bfloat16)

    h2 = jnp.dot(h1, w_ref[1], preferred_element_type=jnp.float32)
    h2 = jnp.maximum(h2 + b2, 0.0).astype(jnp.bfloat16)

    out = jnp.dot(h2, w_ref[2], preferred_element_type=jnp.float32) + b3
    o_ref[...] = out.astype(o_ref.dtype)


def _choose_batch_tiling(B, max_tile=512):
    """Returns (padded_batch, tile_rows).

    Small/medium batches: pad to the next multiple of 8 (sublane) and run a
    single grid step -> minimal padding + single per-step overhead.
    Large batches: 512-row tiles (amortizes per-step overhead, tiny VMEM use).
    """
    b8 = 8 * pl.cdiv(B, 8)
    if b8 <= max_tile:
        return b8, b8
    return max_tile * pl.cdiv(B, max_tile), max_tile


def mlp_forward(x, packed):
    """x: (B, state_dim) f32; packed: output of pack_params()."""
    B, state_dim = x.shape
    P = packed["padded_dim"]
    action_dim = packed["action_dim"]
    assert state_dim == packed["state_dim"]

    B_pad, tb = _choose_batch_tiling(B)

    # Pad batch and feature dims to layout-friendly shapes; cast to bf16 for
    # the MXU (halves x DMA bytes). Pad + cast fuse into one XLA op.
    x_p = jnp.pad(x, ((0, B_pad - B), (0, P - state_dim))).astype(jnp.bfloat16)

    out = pl.pallas_call(
        mlp_kernel,
        out_shape=jax.ShapeDtypeStruct((B_pad, P), jnp.float32),
        grid_spec=pltpu.PrefetchScalarGridSpec(
            num_scalar_prefetch=0,
            grid=(B_pad // tb,),
            in_specs=[
                pl.BlockSpec((tb, P), lambda i: (i, 0)),        # x tile
                pl.BlockSpec((3, P, P), lambda i: (0, 0, 0)),   # packed W (resident)
                pl.BlockSpec((3, P), lambda i: (0, 0)),         # packed b (resident)
            ],
            out_specs=pl.BlockSpec((tb, P), lambda i: (i, 0)),
        ),
        compiler_params=pltpu.CompilerParams(
            dimension_semantics=("parallel",)),
    )(x_p, packed["w"], packed["b"])

    return out[:B, :action_dim]


def init_params(key, state_dim, action_dim, hidden_dim=128):
    """Deterministic synthetic init (PyTorch-like uniform fan-in bounds).

    Weights are stored transposed vs. nn.Linear: W has shape (in, out) so the
    forward pass is y = x @ W + b.
    """
    ks = jax.random.split(key, 6)

    def linear(kw, kb, fan_in, fan_out):
        bound = 1.0 / jnp.sqrt(fan_in)
        w = jax.random.uniform(kw, (fan_in, fan_out), jnp.float32, -bound, bound)
        b = jax.random.uniform(kb, (1, fan_out), jnp.float32, -bound, bound)
        return w, b

    w1, b1 = linear(ks[0], ks[1], state_dim, hidden_dim)
    w2, b2 = linear(ks[2], ks[3], hidden_dim, hidden_dim)
    w3, b3 = linear(ks[4], ks[5], hidden_dim, action_dim)
    return {"w1": w1, "b1": b1, "w2": w2, "b2": b2, "w3": w3, "b3": b3}


def pack_params(p, state_dim, hidden_dim, action_dim):
    """One-time pad + pack + bf16 cast of the three layers."""
    P = 128 * pl.cdiv(max(state_dim, hidden_dim, action_dim), 128)

    w = jnp.zeros((3, P, P), jnp.float32)
    w = w.at[0, :state_dim, :hidden_dim].set(p["w1"])
    w = w.at[1, :hidden_dim, :hidden_dim].set(p["w2"])
    w = w.at[2, :hidden_dim, :action_dim].set(p["w3"])

    b = jnp.zeros((3, P), jnp.float32)
    b = b.at[0, :hidden_dim].set(p["b1"][0])
    b = b.at[1, :hidden_dim].set(p["b2"][0])
    b = b.at[2, :action_dim].set(p["b3"][0])

    return {
        "w": w.astype(jnp.bfloat16),   # bf16 MXU path, half the weight DMA bytes
        "b": b,                        # biases stay f32
        "state_dim": state_dim,
        "action_dim": action_dim,
        "padded_dim": P,
    }


def mlp_reference_f32(x, p):
    """Original-module semantics in pure f32."""
    h1 = jnp.maximum(x @ p["w1"] + p["b1"], 0.0)
    h2 = jnp.maximum(h1 @ p["w2"] + p["b2"], 0.0)
    return h2 @ p["w3"] + p["b3"]


def mlp_reference_bf16(x, p):
    """Mirrors the kernel's numerics (bf16 matmul inputs, f32 accumulation)."""
    w1 = p["w1"].astype(jnp.bfloat16)
    w2 = p["w2"].astype(jnp.bfloat16)
    w3 = p["w3"].astype(jnp.bfloat16)
    h1 = jnp.dot(x.astype(jnp.bfloat16), w1, preferred_element_type=jnp.float32)
    h1 = jnp.maximum(h1 + p["b1"], 0.0).astype(jnp.bfloat16)
    h2 = jnp.dot(h1, w2, preferred_element_type=jnp.float32)
    h2 = jnp.maximum(h2 + p["b2"], 0.0).astype(jnp.bfloat16)
    return jnp.dot(h2, w3, preferred_element_type=jnp.float32) + p["b3"]


if __name__ == "__main__":
    key = jax.random.PRNGKey(0)
    k_x, k_p, k_x2 = jax.random.split(key, 3)

    state_dim = 16
    action_dim = 8
    hidden_dim = 128

    params = init_params(k_p, state_dim, action_dim, hidden_dim)
    packed = pack_params(params, state_dim, hidden_dim, action_dim)

    # Small demo batch (matches the module's typical per-agent usage):
    # single grid step, batch padded only to 8 rows.
    batch = 8
    x = jax.random.normal(k_x, (batch, state_dim), jnp.float32)
    out = jax.block_until_ready(mlp_forward(x, packed))

    assert out.shape == (batch, action_dim)
    assert jnp.allclose(out, mlp_reference_bf16(x, params), atol=1e-3, rtol=1e-3), \
        "mismatch vs bf16-path reference"
    assert jnp.allclose(out, mlp_reference_f32(x, params), atol=5e-2, rtol=5e-2), \
        "mismatch vs f32 reference"

    # Larger, non-aligned batch (300 -> padded to 304, still one grid step).
    batch2 = 300
    x2 = jax.random.normal(k_x2, (batch2, state_dim), jnp.float32)
    out2 = jax.block_until_ready(mlp_forward(x2, packed))

    assert out2.shape == (batch2, action_dim)
    assert jnp.allclose(out2, mlp_reference_bf16(x2, params), atol=1e-3, rtol=1e-3), \
        "mismatch vs bf16-path reference (batched)"
    assert jnp.allclose(out2, mlp_reference_f32(x2, params), atol=5e-2, rtol=5e-2), \
        "mismatch vs f32 reference (batched)"

    # Big batch path: multi-step grid with 512-row tiles (exercises pipelining
    # and megacore sharding of the parallel batch axis).
    batch3 = 1100
    x3 = jax.random.normal(k_x, (batch3, state_dim), jnp.float32)
    out3 = jax.block_until_ready(mlp_forward(x3, packed))
    assert out3.shape == (batch3, action_dim)
    assert jnp.allclose(out3, mlp_reference_bf16(x3, params), atol=1e-3, rtol=1e-3), \
        "mismatch vs bf16-path reference (large batch)"

    print("KERNEL_OK")
</pallas_src>

<mosaic_0001>
module attributes {stable_mosaic.version = 11 : i64} {
  func.func @mlp_kernel(%arg0: i32, %arg1: memref<8x128xbf16, #tpu.memory_space<vmem>>, %arg2: memref<3x128x128xbf16, #tpu.memory_space<vmem>>, %arg3: memref<3x128xf32, #tpu.memory_space<vmem>>, %arg4: memref<8x128xf32, #tpu.memory_space<vmem>>) attributes {dimension_semantics = [#tpu.dimension_semantics<parallel>], iteration_bounds = array<i64: 1>, scalar_prefetch = 0 : i64, scratch_operands = 0 : i64, tpu.core_type = #tpu.core_type<tc>, window_params = [{transform_indices = @transform_0, window_bounds = array<i64: 8, 128>}, {pipeline_mode = #tpu.pipeline_mode<synchronous>, transform_indices = @transform_1, window_bounds = array<i64: 3, 128, 128>}, {pipeline_mode = #tpu.pipeline_mode<synchronous>, transform_indices = @transform_2, window_bounds = array<i64: 3, 128>}, {transform_indices = @transform_3, window_bounds = array<i64: 8, 128>}]} {
    %c0 = arith.constant 0 : index
    %c0_0 = arith.constant 0 : index
    %0 = vector.load %arg1[%c0, %c0_0] : memref<8x128xbf16, #tpu.memory_space<vmem>>, vector<8x128xbf16>
    %c0_1 = arith.constant 0 : index
    %c0_2 = arith.constant 0 : index
    %1 = vector.load %arg3[%c0_1, %c0_2] : memref<3x128xf32, #tpu.memory_space<vmem>>, vector<1x128xf32>
    %c1 = arith.constant 1 : index
    %c0_3 = arith.constant 0 : index
    %2 = vector.load %arg3[%c1, %c0_3] : memref<3x128xf32, #tpu.memory_space<vmem>>, vector<1x128xf32>
    %c2 = arith.constant 2 : index
    %c0_4 = arith.constant 0 : index
    %3 = vector.load %arg3[%c2, %c0_4] : memref<3x128xf32, #tpu.memory_space<vmem>>, vector<1x128xf32>
    %c0_5 = arith.constant 0 : index
    %c0_6 = arith.constant 0 : index
    %c0_7 = arith.constant 0 : index
    %4 = vector.load %arg2[%c0_5, %c0_6, %c0_7] : memref<3x128x128xbf16, #tpu.memory_space<vmem>>, vector<1x128x128xbf16>
    %5 = vector.shape_cast %4 : vector<1x128x128xbf16> to vector<128x128xbf16>
    %cst = arith.constant dense<0.000000e+00> : vector<8x128xf32>
    %6 = tpu.matmul %0, %5, %cst {dimension_numbers = #tpu.dot_dimension_numbers<[1], [0], [0], [1], [0, 0, 1, 1], [], []>} : vector<8x128xbf16>, vector<128x128xbf16>, vector<8x128xf32> -> vector<8x128xf32>
    %7 = vector.broadcast %1 : vector<1x128xf32> to vector<8x128xf32>
    %8 = arith.addf %6, %7 : vector<8x128xf32>
    %cst_8 = arith.constant 0.000000e+00 : f32
    %9 = vector.broadcast %cst_8 : f32 to vector<8x128xf32>
    %10 = arith.maximumf %8, %9 : vector<8x128xf32>
    %11 = arith.truncf %10 : vector<8x128xf32> to vector<8x128xbf16>
    %c1_9 = arith.constant 1 : index
    %c0_10 = arith.constant 0 : index
    %c0_11 = arith.constant 0 : index
    %12 = vector.load %arg2[%c1_9, %c0_10, %c0_11] : memref<3x128x128xbf16, #tpu.memory_space<vmem>>, vector<1x128x128xbf16>
    %13 = vector.shape_cast %12 : vector<1x128x128xbf16> to vector<128x128xbf16>
    %cst_12 = arith.constant dense<0.000000e+00> : vector<8x128xf32>
    %14 = tpu.matmul %11, %13, %cst_12 {dimension_numbers = #tpu.dot_dimension_numbers<[1], [0], [0], [1], [0, 0, 1, 1], [], []>} : vector<8x128xbf16>, vector<128x128xbf16>, vector<8x128xf32> -> vector<8x128xf32>
    %15 = vector.broadcast %2 : vector<1x128xf32> to vector<8x128xf32>
    %16 = arith.addf %14, %15 : vector<8x128xf32>
    %cst_13 = arith.constant 0.000000e+00 : f32
    %17 = vector.broadcast %cst_13 : f32 to vector<8x128xf32>
    %18 = arith.maximumf %16, %17 : vector<8x128xf32>
    %19 = arith.truncf %18 : vector<8x128xf32> to vector<8x128xbf16>
    %c2_14 = arith.constant 2 : index
    %c0_15 = arith.constant 0 : index
    %c0_16 = arith.constant 0 : index
    %20 = vector.load %arg2[%c2_14, %c0_15, %c0_16] : memref<3x128x128xbf16, #tpu.memory_space<vmem>>, vector<1x128x128xbf16>
    %21 = vector.shape_cast %20 : vector<1x128x128xbf16> to vector<128x128xbf16>
    %cst_17 = arith.constant dense<0.000000e+00> : vector<8x128xf32>
    %22 = tpu.matmul %19, %21, %cst_17 {dimension_numbers = #tpu.dot_dimension_numbers<[1], [0], [0], [1], [0, 0, 1, 1], [], []>} : vector<8x128xbf16>, vector<128x128xbf16>, vector<8x128xf32> -> vector<8x128xf32>
    %23 = vector.broadcast %3 : vector<1x128xf32> to vector<8x128xf32>
    %24 = arith.addf %22, %23 : vector<8x128xf32>
    %c0_18 = arith.constant 0 : index
    %c0_19 = arith.constant 0 : index
    %25 = vector.load %arg4[%c0_18, %c0_19] : memref<8x128xf32, #tpu.memory_space<vmem>>, vector<8x128xf32>
    tpu.vector_store %arg4[%c0_18, %c0_19], %24 {strides = array<i32>} : memref<8x128xf32, #tpu.memory_space<vmem>>, vector<8x128xf32>,
    return
  }
  func.func @transform_0(%arg0: i32) -> (i32, i32) {
    %c0_i32 = arith.constant 0 : i32
    %c0_i32_0 = arith.constant 0 : i32
    return %arg0, %c0_i32 : i32, i32
  }
  func.func @transform_1(%arg0: i32) -> (i32, i32, i32) {
    %c0_i32 = arith.constant 0 : i32
    %c0_i32_0 = arith.constant 0 : i32
    %c0_i32_1 = arith.constant 0 : i32
    %c0_i32_2 = arith.constant 0 : i32
    return %c0_i32, %c0_i32_0, %c0_i32_1 : i32, i32, i32
  }
  func.func @transform_2(%arg0: i32) -> (i32, i32) {
    %c0_i32 = arith.constant 0 : i32
    %c0_i32_0 = arith.constant 0 : i32
    %c0_i32_1 = arith.constant 0 : i32
    return %c0_i32, %c0_i32_0 : i32, i32
  }
  func.func @transform_3(%arg0: i32) -> (i32, i32) {
    %c0_i32 = arith.constant 0 : i32
    %c0_i32_0 = arith.constant 0 : i32
    return %arg0, %c0_i32 : i32, i32
  }
}

</mosaic_0001>

<bundles_post_ra>
// kernel: tpu_custom_call.1
= control target key start
LH: loop header
LB: loop body
LE: loop exit
PB: predicated region body
PF: predicated region fallthrough
CT: control target
= control target key end

     0   :  { %8 = vsyncpa [#allocation3], 0  ;;  %s706_s0 = inlined_call_operand.hbm [shape: bf16[8,128], index: 0, kind: input, shape index: {}]   ;;  %s707_s1 = inlined_call_operand.hbm [shape: bf16[3,128,128], index: 1, kind: input, shape index: {}]   ;;  %s708_s2 = inlined_call_operand.hbm [shape: f32[3,128], index: 2, kind: input, shape index: {}]   ;;  %s709_s3 = inlined_call_operand.hbm [shape: f32[8,128], index: 3, kind: output, shape index: {}]  }
   0x1   :  { %9 = vsyncpa [#allocation6], 0 }
   0x2   :  { %10 = vsyncpa [#allocation4], 0  ;;  %s636_s12 = smov [#allocation5]  }
   0x3   :  { %s26_s13 = sshll.u32 %s636_s12, 4  ;;  %s27_s13 = int_to_ptr.vmem [resolvable:$true] %s26_s13 }
   0x4   :  { %s558_s14 = scalar_lea.vmem %s27_s13, 3072  ;;  %p563_p1 = scmp.lt.s32.totalorder %s27_s13, %s27_s13 }
   0x5   :  { %p559_p0 = scmp.ne.s32.totalorder %s27_s13, %s558_s14  ;;  %p564_p2 = scmp.lt.s32.totalorder %s558_s14, %s558_s14 }
   0x7   :  { %p565_p3 = por %p564_p2, %p563_p1 }
   0x9   :  { %p566_p4 = pnand %p565_p3, %p559_p0 }
   0xb   :  { %569 = shalt.err (!%p566_p4)
}
   0xc   :  { %s637_s15 = smov 64   ;;  %s638_s16 = smov 4  }
   0xd   :  { %32 = dma.hbm_to_vmem [thread:$0]  %s707_s1, 3072, %s27_s13, [#allocation6], %s637_s15, %s637_s15, %s638_s16  }
   0xe   :  { %s639_s19 = smov [#allocation2]   ;;  %s640_s21 = smov [#allocation7]  }
   0xf   :  { %s17_s20 = sshll.u32 %s639_s19, 4  ;;  %s39_s22 = sshll.u32 %s640_s21, 4  ;;  %s18_s20 = int_to_ptr.vmem [resolvable:$true] %s17_s20  ;;  %s40_s22 = int_to_ptr.vmem [resolvable:$true] %s39_s22 }
  0x10   :  { %s578_s23 = scalar_lea.vmem %s18_s20, 64  ;;  %p583_p6 = scmp.lt.s32.totalorder %s18_s20, %s18_s20 }
  0x11   :  { %p579_p5 = scmp.ne.s32.totalorder %s18_s20, %s578_s23  ;;  %p584_p7 = scmp.lt.s32.totalorder %s578_s23, %s578_s23 }
  0x13   :  { %p585_p8 = por %p584_p7, %p583_p6 }
  0x15   :  { %p586_p9 = pnand %p585_p8, %p579_p5 }
  0x17   :  { %589 = shalt.err (!%p586_p9)
}
  0x18   :  { %20 = dma.hbm_to_vmem [thread:$0]  %s706_s0, 64, %s18_s20, [#allocation3]  }
  0x19   :  { %s598_s26 = scalar_lea.vmem %s40_s22, 64  ;;  %p603_p11 = scmp.lt.s32.totalorder %s40_s22, %s40_s22 }
  0x1a   :  { %p599_p10 = scmp.ne.s32.totalorder %s40_s22, %s598_s26  ;;  %p604_p12 = scmp.lt.s32.totalorder %s598_s26, %s598_s26 }
  0x1c   :  { %p605_p13 = por %p604_p12, %p603_p11 }
  0x1e   :  { %p606_p0 = pnand %p605_p13, %p599_p10 }
  0x20   :  { %609 = shalt.err (!%p606_p0)
}
  0x21   :  { %42 = dma.hbm_to_vmem [thread:$0]  %s708_s2, 64, %s40_s22, [#allocation6]  }
  0x22   :  { %630 = dma.done.wait [#allocation3], 64  }
  0x23   :  { %631 = vsyncadd [#allocation3], 4294967232 }
  0x24   :  { %632 = dma.done.wait [#allocation6], 3136  }
  0x25   :  { %633 = vsyncadd [#allocation6], 4294964160  ;;  %v641_v0 = vmov 0.0   ;;  %vm642_vm0 = vmmov 0   ;;  %v526_v1 = vld [vmem:[#allocation5 + $0x38] sm:$0xff]   ;;  %v527_v2 = vld [vmem:[#allocation5 + $0x30] sm:$0xff]  }
  0x26   :  { %458 = vmatprep.subr.bf16.mxu0 %v641_v0  ;;  %474 = vmatprep.mubr.msk.bf16.mxu0 %vm642_vm0, %v641_v0  ;;  %v528_v3 = vld [vmem:[#allocation5 + $0x28] sm:$0xff]   ;;  %v534_v4 = vld [vmem:[#allocation5 + $0x78] sm:$0xff]   ;;  %v529_v5 = vld [vmem:[#allocation5 + $0x20] sm:$0xff]   ;;  %s643_s0 = smov [#allocation8]  }
  0x27   :  { %478 = vmatprep.subr.bf16.mxu1 %v641_v0  ;;  %494 = vmatprep.mubr.msk.bf16.mxu1 %vm642_vm0, %v641_v0  ;;  %v535_v6 = vld [vmem:[#allocation5 + $0x70] sm:$0xff]   ;;  %v530_v7 = vld [vmem:[#allocation5 + $0x18] sm:$0xff]   ;;  %v536_v8 = vld [vmem:[#allocation5 + $0x68] sm:$0xff]   ;;  %s394_s2 = sshll.u32 %s643_s0, 4  ;;  %s395_s2 = int_to_ptr.vmem [resolvable:$true] %s394_s2 }
  0x28   :  { %459 = vmatpush3.bf16.msra.mxu0 %v526_v1  ;;  %479 = vmatpush3.bf16.msra.mxu1 %v534_v4  ;;  %v531_v9 = vld [vmem:[#allocation5 + $0x10] sm:$0xff]   ;;  %v537_v10 = vld [vmem:[#allocation5 + $0x60] sm:$0xff]   ;;  %v532_v11 = vld [vmem:[#allocation5 + $0x8] sm:$0xff]   ;;  %s610_s28 = scalar_lea.vmem %s395_s2, 128  ;;  %p615_p2 = scmp.lt.s32.totalorder %s395_s2, %s395_s2 }
  0x29   :  { %460 = vmatprep.subr.bf16.mxu0 %v641_v0  ;;  %480 = vmatprep.subr.bf16.mxu1 %v641_v0  ;;  %v538_v12 = vld [vmem:[#allocation5 + $0x58] sm:$0xff]   ;;  %v533_v13 = vld [vmem:[#allocation5] sm:$0xff]   ;;  %v539_v14 = vld [vmem:[#allocation5 + $0x50] sm:$0xff]   ;;  %p611_p1 = scmp.ne.s32.totalorder %s395_s2, %s610_s28  ;;  %p616_p3 = scmp.lt.s32.totalorder %s610_s28, %s610_s28 }
  0x2a   :  { %v53_v15 = vld [vmem:[#allocation2] sm:$0xf]  ;;  %v540_v16 = vld [vmem:[#allocation5 + $0x48] sm:$0xff]   ;;  %v541_v17 = vld [vmem:[#allocation5 + $0x40] sm:$0xff]  }
  0x2b   :  { %v542_v18 = vld [vmem:[#allocation5 + $0xb8] sm:$0xff]   ;;  %v543_v19 = vld [vmem:[#allocation5 + $0xb0] sm:$0xff]   ;;  %v544_v20 = vld [vmem:[#allocation5 + $0xa8] sm:$0xff]   ;;  %p617_p4 = por %p616_p3, %p615_p2 }
  0x2c   :  { %461 = vmatpush3.bf16.msra.mxu0 %v527_v2  ;;  %481 = vmatpush3.bf16.msra.mxu1 %v535_v6  ;;  %v545_v21 = vld [vmem:[#allocation5 + $0xa0] sm:$0xff]   ;;  %v546_v22 = vld [vmem:[#allocation5 + $0x98] sm:$0xff]   ;;  %v547_v23 = vld [vmem:[#allocation5 + $0x90] sm:$0xff]  }
  0x2d   :  { %462 = vmatprep.subr.bf16.mxu0 %v641_v0  ;;  %482 = vmatprep.subr.bf16.mxu1 %v641_v0  ;;  %v404_v24 = vld [vmem:[#allocation7] ss:$0 sm:$0xff]  ;;  %v548_v32 = vld [vmem:[#allocation5 + $0x88] sm:$0xff]   ;;  %v413_v34 = vld [vmem:[#allocation7 + $0x1] ss:$0 sm:$0xff]  ;;  %p618_p5 = pnand %p617_p4, %p611_p1 }
  0x2e   :  { %v549_v33 = vld [vmem:[#allocation5 + $0x80] sm:$0xff]  }
  0x2f   :  { %v422_v42 = vld [vmem:[#allocation7 + $0x2] ss:$0 sm:$0xff] }
  0x30   :  { %463 = vmatpush3.bf16.msra.mxu0 %v528_v3  ;;  %483 = vmatpush3.bf16.msra.mxu1 %v536_v8 }
  0x31   :  { %464 = vmatprep.subr.bf16.mxu0 %v641_v0  ;;  %484 = vmatprep.subr.bf16.mxu1 %v641_v0 }
  0x34   :  { %465 = vmatpush3.bf16.msra.mxu0 %v529_v5  ;;  %485 = vmatpush3.bf16.msra.mxu1 %v537_v10 }
  0x35   :  { %466 = vmatprep.subr.bf16.mxu0 %v641_v0  ;;  %486 = vmatprep.subr.bf16.mxu1 %v641_v0 }
  0x38   :  { %467 = vmatpush3.bf16.msra.mxu0 %v530_v7  ;;  %487 = vmatpush3.bf16.msra.mxu1 %v538_v12 }
  0x39   :  { %468 = vmatprep.subr.bf16.mxu0 %v641_v0  ;;  %488 = vmatprep.subr.bf16.mxu1 %v641_v0 }
  0x3c   :  { %469 = vmatpush3.bf16.msra.mxu0 %v531_v9  ;;  %489 = vmatpush3.bf16.msra.mxu1 %v539_v14 }
  0x3d   :  { %470 = vmatprep.subr.bf16.mxu0 %v641_v0  ;;  %490 = vmatprep.subr.bf16.mxu1 %v641_v0 }
  0x40   :  { %471 = vmatpush3.bf16.msra.mxu0 %v532_v11  ;;  %491 = vmatpush3.bf16.msra.mxu1 %v540_v16 }
  0x41   :  { %472 = vmatprep.subr.bf16.mxu0 %v641_v0  ;;  %492 = vmatprep.subr.bf16.mxu1 %v641_v0 }
  0x44   :  { %473 = vmatpush3.bf16.msra.mxu0 %v533_v13  ;;  %493 = vmatpush3.bf16.msra.mxu1 %v541_v17 }
  0x45   :  { %498 = vmatprep.subr.bf16.mxu0 %v641_v0 }
  0x47   :  { %475 = vmatmul.mubr.bf16.vlgmr.msra.gmra.mxu0 %v53_v15 }
  0x48   :  { %514 = vmatprep.mubr.msk.bf16.mxu0 %vm642_vm0, %v641_v0  ;;  %499 = vmatpush3.bf16.msra.mxu0 %v542_v18 }
  0x49   :  { %500 = vmatprep.subr.bf16.mxu0 %v641_v0 }
  0x4c   :  { %501 = vmatpush3.bf16.msra.mxu0 %v543_v19 }
  0x4d   :  { %502 = vmatprep.subr.bf16.mxu0 %v641_v0 }
  0x50   :  { %503 = vmatpush3.bf16.msra.mxu0 %v544_v20 }
  0x51   :  { %504 = vmatprep.subr.bf16.mxu0 %v641_v0 }
  0x54   :  { %505 = vmatpush3.bf16.msra.mxu0 %v545_v21 }
  0x55   :  { %506 = vmatprep.subr.bf16.mxu0 %v641_v0 }
  0x58   :  { %507 = vmatpush3.bf16.msra.mxu0 %v546_v22 }
  0x59   :  { %508 = vmatprep.subr.bf16.mxu0 %v641_v0 }
  0x5c   :  { %509 = vmatpush3.bf16.msra.mxu0 %v547_v23 }
  0x5d   :  { %510 = vmatprep.subr.bf16.mxu0 %v641_v0 }
  0x60   :  { %511 = vmatpush3.bf16.msra.mxu0 %v548_v32 }
  0x61   :  { %512 = vmatprep.subr.bf16.mxu0 %v641_v0 }
  0x64   :  { %513 = vmatpush3.bf16.msra.mxu0 %v549_v33 }
 0x107   :  { %v159_v25 = vpop.f32.mrf.mxu0 }
 0x108   :  { %v160_v26 = vadd.f32 %v404_v24, %v159_v25 }
 0x109   :  { %v476_v27 = vpop.f32.mrf.mxu0 }
 0x10a   :  { %v165_v28 = vmax.f32 %v160_v26, 0.0 }
 0x10b   :  { %v162_v29 = vpop.f32.mrf.mxu0 }
 0x10c   :  { %v166_v30 = vpack.c.bf16 %v165_v28, %v165_v28 }
 0x10d   :  { %v477_v31 = vpop.f32.mrf.mxu0 }
 0x10e   :  { %495 = vmatmul.mubr.bf16.vlgmr.msra.gmra.mxu1 %v166_v30 }
 0x1ce   :  { %v270_v35 = vpop.f32.mrf.mxu1 }
 0x1cf   :  { %v271_v36 = vadd.f32 %v413_v34, %v270_v35 }
 0x1d0   :  { %v496_v37 = vpop.f32.mrf.mxu1 }
 0x1d1   :  { %v276_v38 = vmax.f32 %v271_v36, 0.0 }
 0x1d2   :  { %v273_v39 = vpop.f32.mrf.mxu1 }
 0x1d3   :  { %v277_v40 = vpack.c.bf16 %v276_v38, %v276_v38 }
 0x1d4   :  { %v497_v41 = vpop.f32.mrf.mxu1 }
 0x1d5   :  { %515 = vmatmul.mubr.bf16.vlgmr.msra.gmra.mxu0 %v277_v40 }
 0x295   :  { %v381_v43 = vpop.f32.mrf.mxu0 }
 0x296   :  { %v382_v44 = vadd.f32 %v422_v42, %v381_v43 }
 0x297   :  { %v516_v45 = vpop.f32.mrf.mxu0 }
 0x298   :  { %387 = vst [vmem:[#allocation8] sm:$0xff] %v382_v44 }
 0x299   :  { %v384_v46 = vpop.f32.mrf.mxu0 }
 0x29a   :  { %621 = shalt.err (!%p618_p5)
}
 0x29b   :  { %397 = dma.vmem_to_hbm [thread:$0]  %s395_s2, 128, %s709_s3, [#allocation4]   ;;  %v517_v47 = vpop.f32.mrf.mxu0 }
 0x29c   :  { %634 = dma.done.wait [#allocation4], 128  }
 0x29d   :  { %635 = vsyncadd [#allocation4], 4294967168 }
 0x29e   :  { %401 = vsyncpa [#allocation3], 1 }
 0x29f   :  { %402 = vsyncpa [#allocation6], 1 }
 0x2a0   :  { %403 = vsyncpa [#allocation4], 1 }

</bundles_post_ra>
